<compile_context>
chip_gen: v7x
topology: tpu7x:2x2x1
jax: 0.10.0
libtpu: 0.0.40
codegen_flags: <defaults>
</compile_context>

<pallas_src>
import jax
import jax.numpy as jnp
from jax import lax
from jax.experimental import pallas as pl
from jax.experimental.pallas import tpu as pltpu


def _make_kernel(num_s, num_n, l_valid, l_padded):
    """Builds the per-batch kernel body (static shape params closed over)."""
    need_mask = (l_padded != l_valid)
    inv_l = 1.0 / float(l_valid)

    def kernel(x_ref, wsp_ref, bsp_ref, w1_ref, b1_ref, w2_ref,
               wfc_ref, bnsh_ref, out_ref):
        # x_ref: (C, Lp) f32 -- one batch element (channels x flat spatial).
        x = x_ref[...]
        xb = x.astype(jnp.bfloat16)

        # Stacked conv_state / conv_proj (1x1 Conv2d == channel matmul):
        # one bf16 MXU matmul over the full (C, Lp) operand, f32 accumulate.
        xsp = jnp.dot(wsp_ref[...], xb,
                      preferred_element_type=jnp.float32) + bsp_ref[...]
        xs = xsp[:num_s, :]                  # (num_s, Lp)  conv_state output
        xp = xsp[num_s:, :]                  # (num_n, Lp)  conv_proj output

        xs_m = xs
        if need_mask:
            # Zero padded lanes of one operand so padded columns (which carry
            # the conv bias) never enter the xns reduction.
            lane = lax.broadcasted_iota(jnp.int32, xs.shape, 1)
            xs_m = jnp.where(lane < l_valid, xs, 0.0)

        # x_n_state = x_state @ x_proj^T * (1/L)  -> (num_s, num_n)
        # (lane-contracted A.B^T, same pattern Mosaic handles in flash-attn)
        xns = lax.dot_general(xs_m, xp, (((1,), (1,)), ((), ())),
                              preferred_element_type=jnp.float32) * inv_l

        # --- GCN (tiny matmuls, kept in f32) ---
        # conv1 over the "node" axis: h[s, o] = sum_m W1[o, m]*xns[s, m]+b1[o]
        h = lax.dot_general(xns, w1_ref[...], (((1,), (1,)), ((), ())),
                            preferred_element_type=jnp.float32) + b1_ref[...]
        h = jnp.maximum(h + xns, 0.0)        # residual + ReLU
        # conv2 over the "state" axis (bias=False)
        xnr = jnp.dot(w2_ref[...], h, preferred_element_type=jnp.float32)

        # Reverse projection: (num_s, num_n) @ (num_n, Lp) -> (num_s, Lp)
        xst = jnp.dot(xnr, xp, preferred_element_type=jnp.float32)

        # fc_2 (1x1 Conv2d, no bias) with the BN scale pre-folded into the
        # weight -> only the shift-add remains in the epilogue.
        y = jnp.dot(wfc_ref[...], xst.astype(jnp.bfloat16),
                    preferred_element_type=jnp.float32)

        out_ref[...] = x + y + bnsh_ref[...]

    return kernel


@jax.jit
def glore_unit(x_nchw, params):
    (ws, bs, wp, bp, w1, b1, w2, wfc, bn_scale, bn_shift) = params
    N, C, H, W = x_nchw.shape
    L = H * W
    Lp = ((L + 127) // 128) * 128            # lane-dense spatial axis
    num_s = ws.shape[0]
    num_n = wp.shape[0]

    x_ncl = x_nchw.reshape(N, C, L).astype(jnp.float32)
    if Lp != L:
        x_ncl = jnp.pad(x_ncl, ((0, 0), (0, 0), (0, Lp - L)))

    # Host-side parameter folding.
    wsp = jnp.concatenate([ws, wp], axis=0).astype(jnp.bfloat16)        # (s+n, C)
    bsp = jnp.concatenate([bs, bp], axis=0).reshape(num_s + num_n, 1)   # f32
    b12 = b1.reshape(1, num_n)
    wfc_s = (bn_scale[:, None] * wfc).astype(jnp.bfloat16)              # BN scale folded
    bnsh2 = bn_shift.reshape(C, 1)

    kernel = _make_kernel(num_s, num_n, L, Lp)

    # VMEM budget: double-buffered in/out blocks + in-kernel temporaries.
    blk_bytes = C * Lp * 4
    vmem_limit = int(min(100 * 2**20,
                         8 * blk_bytes
                         + 16 * (num_s + num_n) * Lp * 4
                         + (16 << 20)))

    flops_per_elem = (2 * (num_s + num_n) * C * Lp   # stacked projection
                      + 2 * num_s * num_n * Lp       # x_n_state
                      + 2 * num_s * num_n * num_n    # gcn.conv1
                      + 2 * num_s * num_s * num_n    # gcn.conv2
                      + 2 * num_s * num_n * Lp       # reverse projection
                      + 2 * C * num_s * Lp)          # fc_2
    weight_bytes = (wsp.size * 2 + wfc_s.size * 2
                    + (bsp.size + b12.size + bnsh2.size
                       + w1.size + w2.size) * 4)
    cost = pl.CostEstimate(flops=int(N * flops_per_elem),
                           transcendentals=0,
                           bytes_accessed=int(2 * N * C * Lp * 4 + weight_bytes))

    full = lambda shape: pl.BlockSpec(shape, lambda b: (0, 0))

    out = pl.pallas_call(
        kernel,
        out_shape=jax.ShapeDtypeStruct((N, C, Lp), jnp.float32),
        grid_spec=pltpu.PrefetchScalarGridSpec(
            num_scalar_prefetch=0,
            grid=(N,),
            in_specs=[
                pl.BlockSpec((None, C, Lp), lambda b: (b, 0, 0)),  # x (batch-tiled)
                full((num_s + num_n, C)),    # stacked conv_state/conv_proj weight (bf16)
                full((num_s + num_n, 1)),    # stacked bias (f32)
                full((num_n, num_n)),        # gcn.conv1 weight
                full((1, num_n)),            # gcn.conv1 bias
                full((num_s, num_s)),        # gcn.conv2 weight
                full((C, num_s)),            # fc_2 weight * bn_scale (bf16)
                full((C, 1)),                # fused BN shift
            ],
            out_specs=pl.BlockSpec((None, C, Lp), lambda b: (b, 0, 0)),
        ),
        input_output_aliases={0: 0},
        cost_estimate=cost,
        compiler_params=pltpu.CompilerParams(
            dimension_semantics=("parallel",),
            vmem_limit_bytes=vmem_limit),
    )(x_ncl, wsp, bsp, w1, b12, w2, wfc_s, bnsh2)

    return out[:, :, :L].reshape(N, C, H, W)


def glore_reference(x_nchw, params):
    """Pure-JAX f32 reference mirroring the PyTorch forward."""
    (ws, bs, wp, bp, w1, b1, w2, wfc, bn_scale, bn_shift) = params
    N, C, H, W = x_nchw.shape
    L = H * W
    xf = x_nchw.reshape(N, C, L).astype(jnp.float32)

    xs = jnp.einsum('sc,ncl->nsl', ws, xf) + bs[None, :, None]
    xp = jnp.einsum('mc,ncl->nml', wp, xf) + bp[None, :, None]
    xns = jnp.einsum('nsl,nml->nsm', xs, xp) * (1.0 / L)
    h = jnp.einsum('nsm,km->nsk', xns, w1) + b1[None, None, :]
    h = jnp.maximum(h + xns, 0.0)
    xnr = jnp.einsum('ts,nsm->ntm', w2, h)
    xst = jnp.einsum('nsm,nml->nsl', xnr, xp)
    y = jnp.einsum('cs,nsl->ncl', wfc, xst)
    y = bn_scale[None, :, None] * y + bn_shift[None, :, None]
    return (xf + y).reshape(N, C, H, W)


def make_params(key, num_in, num_mid):
    num_s = int(2 * num_mid)
    num_n = int(1 * num_mid)
    ks = jax.random.split(key, 10)
    scale = 0.1
    ws = scale * jax.random.normal(ks[0], (num_s, num_in), jnp.float32)   # conv_state (1x1)
    bs = scale * jax.random.normal(ks[1], (num_s,), jnp.float32)
    wp = scale * jax.random.normal(ks[2], (num_n, num_in), jnp.float32)   # conv_proj (1x1)
    bp = scale * jax.random.normal(ks[3], (num_n,), jnp.float32)
    w1 = scale * jax.random.normal(ks[4], (num_n, num_n), jnp.float32)    # gcn.conv1
    b1 = scale * jax.random.normal(ks[5], (num_n,), jnp.float32)
    w2 = scale * jax.random.normal(ks[6], (num_s, num_s), jnp.float32)    # gcn.conv2 (no bias)
    wfc = scale * jax.random.normal(ks[7], (num_in, num_s), jnp.float32)  # fc_2 (no bias)
    # eval-mode BatchNorm params / running stats, fused to scale & shift
    gamma = 1.0 + 0.05 * jax.random.normal(ks[8], (num_in,), jnp.float32)
    beta = 0.05 * jax.random.normal(ks[9], (num_in,), jnp.float32)
    running_mean = jnp.zeros((num_in,), jnp.float32)
    running_var = jnp.ones((num_in,), jnp.float32)
    eps = 1e-5
    bn_scale = gamma / jnp.sqrt(running_var + eps)
    bn_shift = beta - running_mean * bn_scale
    return (ws, bs, wp, bp, w1, b1, w2, wfc, bn_scale, bn_shift)


if __name__ == "__main__":
    key = jax.random.PRNGKey(0)
    k_x, k_p = jax.random.split(key)

    N, C, H, W = 2, 4, 16, 16     # (n, c, h, w) as in the PyTorch module
    num_mid = 4                   # -> num_s = 8, num_n = 4

    x = jax.random.normal(k_x, (N, C, H, W), jnp.float32)
    params = make_params(k_p, C, num_mid)

    out = glore_unit(x, params)
    out = jax.block_until_ready(out)

    ref = glore_reference(x, params)
    # Tolerance accounts for bf16 MXU inputs (f32 accumulation) vs f32 reference.
    if not jnp.allclose(out, ref, atol=5e-3, rtol=5e-3):
        raise AssertionError("Pallas GloRe_Unit output does not match reference")

    print("KERNEL_OK")
</pallas_src>

<mosaic_0001>
module attributes {stable_mosaic.version = 11 : i64} {
  func.func @kernel(%arg0: i32, %arg1: memref<1x4x256xf32, #tpu.memory_space<vmem>>, %arg2: memref<12x4xbf16, #tpu.memory_space<vmem>>, %arg3: memref<12x1xf32, #tpu.memory_space<vmem>>, %arg4: memref<4x4xf32, #tpu.memory_space<vmem>>, %arg5: memref<1x4xf32, #tpu.memory_space<vmem>>, %arg6: memref<8x8xf32, #tpu.memory_space<vmem>>, %arg7: memref<4x8xbf16, #tpu.memory_space<vmem>>, %arg8: memref<4x1xf32, #tpu.memory_space<vmem>>, %arg9: memref<1x4x256xf32, #tpu.memory_space<vmem>>) attributes {dimension_semantics = [#tpu.dimension_semantics<parallel>], iteration_bounds = array<i64: 2>, scalar_prefetch = 0 : i64, scratch_operands = 0 : i64, tpu.core_type = #tpu.core_type<tc>, window_params = [{transform_indices = @transform_0, window_bounds = array<i64: 1, 4, 256>}, {pipeline_mode = #tpu.pipeline_mode<synchronous>, transform_indices = @transform_1, window_bounds = array<i64: 12, 4>}, {pipeline_mode = #tpu.pipeline_mode<synchronous>, transform_indices = @transform_2, window_bounds = array<i64: 12, 1>}, {pipeline_mode = #tpu.pipeline_mode<synchronous>, transform_indices = @transform_3, window_bounds = array<i64: 4, 4>}, {pipeline_mode = #tpu.pipeline_mode<synchronous>, transform_indices = @transform_4, window_bounds = array<i64: 1, 4>}, {pipeline_mode = #tpu.pipeline_mode<synchronous>, transform_indices = @transform_5, window_bounds = array<i64: 8, 8>}, {pipeline_mode = #tpu.pipeline_mode<synchronous>, transform_indices = @transform_6, window_bounds = array<i64: 4, 8>}, {pipeline_mode = #tpu.pipeline_mode<synchronous>, transform_indices = @transform_7, window_bounds = array<i64: 4, 1>}, {transform_indices = @transform_8, window_bounds = array<i64: 1, 4, 256>}]} {
    %c0 = arith.constant 0 : index
    %c0_0 = arith.constant 0 : index
    %c0_1 = arith.constant 0 : index
    %0 = vector.load %arg1[%c0, %c0_0, %c0_1] : memref<1x4x256xf32, #tpu.memory_space<vmem>>, vector<1x4x256xf32>
    %1 = vector.shape_cast %0 : vector<1x4x256xf32> to vector<4x256xf32>
    %2 = arith.truncf %1 : vector<4x256xf32> to vector<4x256xbf16>
    %c0_2 = arith.constant 0 : index
    %c0_3 = arith.constant 0 : index
    %3 = vector.load %arg2[%c0_2, %c0_3] : memref<12x4xbf16, #tpu.memory_space<vmem>>, vector<12x4xbf16>
    %cst = arith.constant dense<0.000000e+00> : vector<12x256xf32>
    %4 = tpu.matmul %3, %2, %cst {dimension_numbers = #tpu.dot_dimension_numbers<[1], [0], [0], [1], [0, 0, 1, 1], [], []>} : vector<12x4xbf16>, vector<4x256xbf16>, vector<12x256xf32> -> vector<12x256xf32>
    %c0_4 = arith.constant 0 : index
    %c0_5 = arith.constant 0 : index
    %5 = vector.load %arg3[%c0_4, %c0_5] : memref<12x1xf32, #tpu.memory_space<vmem>>, vector<12x1xf32>
    %6 = vector.broadcast %5 : vector<12x1xf32> to vector<12x256xf32>
    %7 = arith.addf %4, %6 : vector<12x256xf32>
    %8 = vector.extract_strided_slice %7 {offsets = [0, 0], sizes = [8, 256], strides = [1, 1]} : vector<12x256xf32> to vector<8x256xf32>
    %9 = vector.extract_strided_slice %7 {offsets = [8, 0], sizes = [4, 256], strides = [1, 1]} : vector<12x256xf32> to vector<4x256xf32>
    %cst_6 = arith.constant dense<0.000000e+00> : vector<8x4xf32>
    %10 = tpu.matmul %8, %9, %cst_6 {dimension_numbers = #tpu.dot_dimension_numbers<[1], [1], [0], [0], [0, 0, 1, 0], [], []>} : vector<8x256xf32>, vector<4x256xf32>, vector<8x4xf32> -> vector<8x4xf32>
    %cst_7 = arith.constant 3.906250e-03 : f32
    %11 = vector.broadcast %cst_7 : f32 to vector<8x4xf32>
    %12 = arith.mulf %10, %11 : vector<8x4xf32>
    %c0_8 = arith.constant 0 : index
    %c0_9 = arith.constant 0 : index
    %13 = vector.load %arg4[%c0_8, %c0_9] : memref<4x4xf32, #tpu.memory_space<vmem>>, vector<4x4xf32>
    %cst_10 = arith.constant dense<0.000000e+00> : vector<8x4xf32>
    %14 = tpu.matmul %12, %13, %cst_10 {dimension_numbers = #tpu.dot_dimension_numbers<[1], [1], [0], [0], [0, 0, 1, 0], [], []>} : vector<8x4xf32>, vector<4x4xf32>, vector<8x4xf32> -> vector<8x4xf32>
    %c0_11 = arith.constant 0 : index
    %c0_12 = arith.constant 0 : index
    %15 = vector.load %arg5[%c0_11, %c0_12] : memref<1x4xf32, #tpu.memory_space<vmem>>, vector<1x4xf32>
    %16 = vector.broadcast %15 : vector<1x4xf32> to vector<8x4xf32>
    %17 = arith.addf %14, %16 : vector<8x4xf32>
    %18 = arith.addf %17, %12 : vector<8x4xf32>
    %cst_13 = arith.constant 0.000000e+00 : f32
    %19 = vector.broadcast %cst_13 : f32 to vector<8x4xf32>
    %20 = arith.maximumf %18, %19 : vector<8x4xf32>
    %c0_14 = arith.constant 0 : index
    %c0_15 = arith.constant 0 : index
    %21 = vector.load %arg6[%c0_14, %c0_15] : memref<8x8xf32, #tpu.memory_space<vmem>>, vector<8x8xf32>
    %cst_16 = arith.constant dense<0.000000e+00> : vector<8x4xf32>
    %22 = tpu.matmul %21, %20, %cst_16 {dimension_numbers = #tpu.dot_dimension_numbers<[1], [0], [0], [1], [0, 0, 1, 1], [], []>} : vector<8x8xf32>, vector<8x4xf32>, vector<8x4xf32> -> vector<8x4xf32>
    %cst_17 = arith.constant dense<0.000000e+00> : vector<8x256xf32>
    %23 = tpu.matmul %22, %9, %cst_17 {dimension_numbers = #tpu.dot_dimension_numbers<[1], [0], [0], [1], [0, 0, 1, 1], [], []>} : vector<8x4xf32>, vector<4x256xf32>, vector<8x256xf32> -> vector<8x256xf32>
    %c0_18 = arith.constant 0 : index
    %c0_19 = arith.constant 0 : index
    %24 = vector.load %arg7[%c0_18, %c0_19] : memref<4x8xbf16, #tpu.memory_space<vmem>>, vector<4x8xbf16>
    %25 = arith.truncf %23 : vector<8x256xf32> to vector<8x256xbf16>
    %cst_20 = arith.constant dense<0.000000e+00> : vector<4x256xf32>
    %26 = tpu.matmul %24, %25, %cst_20 {dimension_numbers = #tpu.dot_dimension_numbers<[1], [0], [0], [1], [0, 0, 1, 1], [], []>} : vector<4x8xbf16>, vector<8x256xbf16>, vector<4x256xf32> -> vector<4x256xf32>
    %27 = arith.addf %1, %26 : vector<4x256xf32>
    %c0_21 = arith.constant 0 : index
    %c0_22 = arith.constant 0 : index
    %28 = vector.load %arg8[%c0_21, %c0_22] : memref<4x1xf32, #tpu.memory_space<vmem>>, vector<4x1xf32>
    %29 = vector.broadcast %28 : vector<4x1xf32> to vector<4x256xf32>
    %30 = arith.addf %27, %29 : vector<4x256xf32>
    %c0_23 = arith.constant 0 : index
    %c0_24 = arith.constant 0 : index
    %c0_25 = arith.constant 0 : index
    %31 = vector.load %arg9[%c0_23, %c0_24, %c0_25] : memref<1x4x256xf32, #tpu.memory_space<vmem>>, vector<1x4x256xf32>
    %32 = vector.shape_cast %31 : vector<1x4x256xf32> to vector<4x256xf32>
    %33 = vector.shape_cast %30 : vector<4x256xf32> to vector<1x4x256xf32>
    tpu.vector_store %arg9[%c0_23, %c0_24, %c0_25], %33 {strides = array<i32>} : memref<1x4x256xf32, #tpu.memory_space<vmem>>, vector<1x4x256xf32>,
    return
  }
  func.func @transform_0(%arg0: i32) -> (i32, i32, i32) {
    %c0_i32 = arith.constant 0 : i32
    %c0_i32_0 = arith.constant 0 : i32
    %c0_i32_1 = arith.constant 0 : i32
    return %arg0, %c0_i32, %c0_i32_0 : i32, i32, i32
  }
  func.func @transform_1(%arg0: i32) -> (i32, i32) {
    %c0_i32 = arith.constant 0 : i32
    %c0_i32_0 = arith.constant 0 : i32
    %c0_i32_1 = arith.constant 0 : i32
    return %c0_i32, %c0_i32_0 : i32, i32
  }
  func.func @transform_2(%arg0: i32) -> (i32, i32) {
    %c0_i32 = arith.constant 0 : i32
    %c0_i32_0 = arith.constant 0 : i32
    %c0_i32_1 = arith.constant 0 : i32
    return %c0_i32, %c0_i32_0 : i32, i32
  }
  func.func @transform_3(%arg0: i32) -> (i32, i32) {
    %c0_i32 = arith.constant 0 : i32
    %c0_i32_0 = arith.constant 0 : i32
    %c0_i32_1 = arith.constant 0 : i32
    return %c0_i32, %c0_i32_0 : i32, i32
  }
  func.func @transform_4(%arg0: i32) -> (i32, i32) {
    %c0_i32 = arith.constant 0 : i32
    %c0_i32_0 = arith.constant 0 : i32
    %c0_i32_1 = arith.constant 0 : i32
    return %c0_i32, %c0_i32_0 : i32, i32
  }
  func.func @transform_5(%arg0: i32) -> (i32, i32) {
    %c0_i32 = arith.constant 0 : i32
    %c0_i32_0 = arith.constant 0 : i32
    %c0_i32_1 = arith.constant 0 : i32
    return %c0_i32, %c0_i32_0 : i32, i32
  }
  func.func @transform_6(%arg0: i32) -> (i32, i32) {
    %c0_i32 = arith.constant 0 : i32
    %c0_i32_0 = arith.constant 0 : i32
    %c0_i32_1 = arith.constant 0 : i32
    return %c0_i32, %c0_i32_0 : i32, i32
  }
  func.func @transform_7(%arg0: i32) -> (i32, i32) {
    %c0_i32 = arith.constant 0 : i32
    %c0_i32_0 = arith.constant 0 : i32
    %c0_i32_1 = arith.constant 0 : i32
    return %c0_i32, %c0_i32_0 : i32, i32
  }
  func.func @transform_8(%arg0: i32) -> (i32, i32, i32) {
    %c0_i32 = arith.constant 0 : i32
    %c0_i32_0 = arith.constant 0 : i32
    %c0_i32_1 = arith.constant 0 : i32
    return %arg0, %c0_i32, %c0_i32_0 : i32, i32, i32
  }
}

</mosaic_0001>

<bundles_post_ra>
// kernel: glore_unit.1
= control target key start
LH: loop header
LB: loop body
LE: loop exit
PB: predicated region body
PF: predicated region fallthrough
CT: control target
= control target key end

     0   :  { %s939_s27 = smov 0   ;;  %s1004_s0 = inlined_call_operand.vmem [shape: f32[2,4,256], index: 0, kind: input, shape index: {}, may-alias: {0,8}]   ;;  %s1005_s1 = inlined_call_operand.vmem [shape: bf16[12,4], index: 1, kind: input, shape index: {}]   ;;  %s1006_s2 = inlined_call_operand.vmem [shape: f32[12,1], index: 2, kind: input, shape index: {}]   ;;  %s1007_s3 = inlined_call_operand.vmem [shape: f32[4,4], index: 3, kind: input, shape index: {}]   ;;  %s1008_s4 = inlined_call_operand.vmem [shape: f32[1,4], index: 4, kind: input, shape index: {}]   ;;  %s1009_s5 = inlined_call_operand.vmem [shape: f32[8,8], index: 5, kind: input, shape index: {}]   ;;  %s1010_s6 = inlined_call_operand.vmem [shape: bf16[4,8], index: 6, kind: input, shape index: {}]   ;;  %s1011_s7 = inlined_call_operand.vmem [shape: f32[4,1], index: 7, kind: input, shape index: {}]   ;;  %s1012_s8 = inlined_call_operand.vmem [shape: f32[2,4,256], index: 8, kind: output, shape index: {}, may-alias: {0,8}]  }
   0x1 LB: > { %s827_s28 = sadd.s32 4294967295, %s888_s27   ;;  %p831_p0 = scmp.ge.s32.totalorder %s888_s27, 1  ;;  %s888_s27 = sphi %s939_s27, %s18_s27  }
   0x2   : > { %p262_p1 = scmp.lt.s32.totalorder %s888_s27, 3 }
   0x4   : > { %p263_p2 = pnand %p831_p0, %p262_p1 }
   0x5   : > { %p296_p3 = scmp.lt.s32.totalorder (!%p263_p2), %s827_s28, 1  ;;  %v890_v0 = vmov (!%p263_p2), 0   ;;  %v316_v1 = vld [vmem:[%s1006_s2 + $0x8] sm:$0xf] (!%p263_p2)  ;;  %v315_v2 = vld [vmem:[%s1006_s2] sm:$0xff] (!%p263_p2)  ;;  %vm336_vm0 = vcmask (!%p263_p2), 1041408   ;;  %v765_v42 = vlaneseq (!%p263_p2) }
   0x6   : > { %266 = sbr.rel (%p263_p2) target bundleno = 1330 (0x532), region = 52  ;;  %375 = vmatprep.mubr.bf16.mxu0 (!%p263_p2), %v890_v0  ;;  %878 = vset.pattern.permute.xlu0 (!%p263_p2), %v890_v0  ;;  %v881_v8 = vld [vmem:[%s1005_s1] sm:$0x3f] (!%p263_p2)   ;;  %vm332_vm1 = vcmask (!%p263_p2), 31744   ;;  %v891_v19 = vmov (!%p263_p2), 0.0   ;;  %vm892_vm2 = vmmov (!%p263_p2), 0  }
   0x7   : > { %324 = vperm.xlu0 (!%p263_p2), %878, %v316_v1   ;;  %879 = vset.pattern.permute.xlu1 (!%p263_p2), %v890_v0  ;;  %v457_v20 = vld [vmem:[%s1007_s3] sm:$0xf] (!%p263_p2)  ;;  %vm544_vm3 = vcmask (!%p263_p2), 64512   ;;  %vm621_vm4 = vcmask (!%p263_p2), 1043456   ;;  %v893_v40 = vmov (!%p263_p2), 839922192  }
   0x8   : > { %v839_v24 = vld [vmem:[%s1008_s4] ss:$0 sm:$0xff] (!%p263_p2)  ;;  %v763_v41 = vunpack.c.l.s4 (!%p263_p2), %v893_v40  ;;  %v766_v44 = vshrl.u32 (!%p263_p2), %v765_v42, 7 }
   0x9   : > { %v543_v30 = vld [vmem:[%s1009_s5] sm:$0xff] (!%p263_p2) }
   0xa   : > { %v757_v33 = vld [vmem:[%s1011_s7] sm:$0xf] (!%p263_p2)  ;;  %v764_v43 = vunpack.c.0.s8 (!%p263_p2), %v763_v41 }
   0xb   : > { %319 = vperm.xlu0 (!%p263_p2), %878, %v315_v2   ;;  %760 = vperm.xlu1 (!%p263_p2), %879, %v757_v33   ;;  %v699_v39 = vld [vmem:[%s1010_s6] sm:$0x3] (!%p263_p2) }
   0xc   : > { %v767_v45 = vsub.s32 (!%p263_p2), %v764_v43, %v766_v44 }
   0xd   : > { %s1014_s28 = smov (!%p296_p3, %s827_s28), 1 }
   0xe   : > { %s850_s11 = sshll.u32 %s1014_s28, 3 }
   0xf   : > { %s300_s14 = scalar_lea.vmem %s1004_s0, %s850_s11  ;;  %s305_s9 = scalar_lea.vmem %s1012_s8, %s850_s11 }
  0x10   : > { %v961_v3 = vld [vmem:[%s300_s14] sm:$0xff] }
  0x11   : > { %v309_v4 = vcombine.high %v961_v3, %v961_v3  ;;  %v311_v5 = vpack.c.bf16 %v961_v3, %v961_v3 }
  0x13   : > { %v312_v6 = vpack.c.bf16 %v309_v4, %v309_v4  ;;  %v338_v7 = vsel %vm336_vm0, %v311_v5, 0 }
  0x15   : > { %837 = vmatprep.subr.msk.bf16.mxu0 %vm336_vm0, %v312_v6 }
  0x16   : > { %344 = vmatpush1.bf16.msra.mxu0 %v338_v7 }
  0x19   : > { %838 = vmatmul.mubr.msk.bf16.vlgmr.msra.gmra.mrb[0].mxu0 %vm332_vm1, %v881_v8 }
  0x1a   : > { %743 = vmatprep.mubr.bf16.mxu0 %v890_v0 }
  0x86   : > { %v325_v9 = vpop.permute.xlu0 %324 }
  0x8a   : > { %v320_v10 = vpop.permute.xlu0 %319  ;;  %v761_v46 = vpop.permute.xlu1 %760 }
  0x8b   : > { %v768_v51 = vrot.slane %v761_v46, %v767_v45 }
  0xec   : > { %v377_v11 = vpop.f32.mrb[0].mxu0 }
  0xed   : > { %v379_v12 = vpop.f32.mrb[1].mxu0  ;;  %v378_v18 = vadd.f32 %v377_v11, %v320_v10 }
  0xee   : > { %v381_v13 = vpop.f32.mrb[2].mxu0  ;;  %v380_v14 = vadd.f32 %v379_v12, %v320_v10 }
  0xef   : > { %v383_v15 = vpop.f32.mrb[3].mxu0  ;;  %v382_v17 = vadd.f32 %v381_v13, %v325_v9 }
  0xf0   : > { %v384_v16 = vadd.f32 %v383_v15, %v325_v9  ;;  %450 = vmatprep.mubr.f32.mxu1 %v380_v14 }
  0xf2   : > { %386 = vmatprep.subr.mxu1 %v384_v16 }
  0xf3   : > { %387 = vmatpush1.xpose.msra.mxu1 %v382_v17 }
  0xf4   : > { %856 = vmatprep.subr.mxu1 %v891_v19 }
  0xf6   : > { %451 = vmatmul.mubr.f32.vlgmr.msra.gmra.mrb[0].mxu1 %v378_v18 }
  0xf7   : > { %857 = vmatpush3.xpose.msk.msra.mxu1 %vm332_vm1, %v457_v20  ;;  %858 = vmatprep.mubr.msk.f32.mxu1 %vm892_vm2, %v891_v19 }
  0xf8   : > { %861 = vmatprep.subr.mxu1 %v891_v19 }
 0x1c9   : > { %v452_v21 = vpop.f32.mrb[0].mxu1 }
 0x1ca   : > { %v456_v22 = vmul.f32 0.00390625, %v452_v21  ;;  %v454_v23 = vpop.f32.mrb[1].mxu1 }
 0x1cc   : > { %859 = vmatmul.mubr.msk.f32.vlgmr.msra.gmra.mrb[2].mxu1 %vm332_vm1, %v456_v22 }
 0x1cd   : > { %863 = vmatprep.mubr.msk.f32.mxu1 %vm892_vm2, %v891_v19 }
 0x29f   : > { %v537_v25 = vpop.f32.mrb[2].mxu1 }
 0x2a0   : > { %v538_v26 = vadd.f32 %v839_v24, %v537_v25  ;;  %v860_v27 = vpop.f32.mrb[3].mxu1 }
 0x2a2   : > { %v541_v28 = vadd.f32 %v538_v26, %v456_v22 }
 0x2a4   : > { %v542_v29 = vmax.f32 %v541_v28, 0.0 }
 0x2a6   : > { %862 = vmatpush3.msra.mxu1 %v542_v29 }
 0x2a7   : > { %864 = vmatmul.mubr.msk.f32.vlgmr.msra.gmra.mrb[4].mxu1 %vm544_vm3, %v543_v30  ;;  %843 = vmatprep.subr.msk.mxu1 %vm621_vm4, %v384_v16 }
 0x2a8   : > { %844 = vmatpush1.msk.msra.mxu1 %vm621_vm4, %v382_v17  ;;  %692 = vmatprep.mubr.f32.mxu1 %v891_v19 }
 0x37a   : > { %v614_v31 = vpop.f32.mrb[4].mxu1 }
 0x37b   : > { %v865_v32 = vpop.f32.mrb[5].mxu1  ;;  %845 = vmatmul.mubr.msk.f32.vlgmr.msra.gmra.mrb[6].mxu1 %vm332_vm1, %v614_v31 }
 0x44e   : > { %v694_v34 = vpop.f32.mrb[6].mxu1 }
 0x44f   : > { %v700_v35 = vpack.c.bf16 %v694_v34, %v694_v34  ;;  %v696_v36 = vpop.f32.mrb[7].mxu1 }
 0x450   : > { %v701_v37 = vpack.c.bf16 %v696_v36, %v696_v36 }
 0x451   : > { %v706_v38 = vsel %vm621_vm4, %v700_v35, 0 }
 0x452   : > { %846 = vmatprep.subr.msk.bf16.mxu0 %vm621_vm4, %v701_v37 }
 0x453   : > { %712 = vmatpush1.bf16.msra.mxu0 %v706_v38 }
 0x456   : > { %847 = vmatmul.mubr.msk.bf16.vlgmr.msra.gmra.mrb[4].mxu0 %vm544_vm3, %v699_v39 }
 0x529   : > { %v745_v47 = vpop.f32.mrb[4].mxu0 }
 0x52a   : > { %v747_v48 = vpop.f32.mrb[5].mxu0 }
 0x52b   : > { %v754_v49 = vcombine.low %v745_v47, %v747_v48  ;;  %v749_v50 = vpop.f32.mrb[6].mxu0 }
 0x52c   : > { %v750_v52 = vpop.f32.mrb[7].mxu0 }
 0x52d   : > { %v756_v53 = vadd.f32 %v754_v49, %v961_v3 }
 0x52f   : > { %v770_v54 = vadd.f32 %v768_v51, %v756_v53 }
 0x531   : > { %771 = vst [vmem:[%s305_s9] sm:$0xff] %v770_v54 }
 0x532 PF: > { %s18_s27 = sadd.s32 1, %s888_s27  }
 0x533   : > { %p15_p4 = scmp.ge.s32.totalorder %s18_s27, 4  }
 0x535   :  { %17 = sbr.rel (!%p15_p4) target bundleno = 1 (0x1), region = 82 }

</bundles_post_ra>
